<compile_context>
chip_gen: v6e
topology: v6e:2x2x1
jax: 0.10.0
libtpu: 0.0.40
codegen_flags: <defaults>
</compile_context>

<pallas_src>
import functools

import jax
import jax.numpy as jnp
from jax.experimental import pallas as pl
from jax.experimental.pallas import tpu as pltpu

IN_F = 4     # linear1 in_features
HID = 25     # hidden width (linear1/linear2 out_features)
OUT_F = 2    # linear3 out_features
LANES = 128  # lane-padded feature width used inside the kernel

# Packed parameter slab layout (all rows are 128 lanes wide, f32, zero-padded):
_W1_ROW0 = 0                       # rows 0..3    : W1^T  (4 rows, 25 valid cols)
_B1_ROW = 4                        # row  4       : b1    (25 valid cols)
_B2_ROW = 5                        # row  5       : b2    (25 valid cols)
_B3_ROW = 6                        # row  6       : b3    (2 valid cols)
_W2_ROW0 = 8                       # rows 8..135  : W2^T padded to (128, 128)
_W3_ROW0 = 8 + LANES               # rows 136..263: W3^T padded to (128, 128)
_SLAB_ROWS = 8 + 2 * LANES         # 264 rows x 128 lanes x 4 B ~= 132 KiB


def _round_up(n, m):
    return ((n + m - 1) // m) * m


def _qnet_kernel(x_ref, p_ref, o_ref):
    x = x_ref[...]                                    # (TB, 4)
    w1 = p_ref[_W1_ROW0:_W1_ROW0 + IN_F, :]           # (4, 128)  (cols >= 25 are 0)
    b1 = p_ref[_B1_ROW:_B1_ROW + 1, :]                # (1, 128)
    b2 = p_ref[_B2_ROW:_B2_ROW + 1, :]
    b3 = p_ref[_B3_ROW:_B3_ROW + 1, :]
    w2 = p_ref[_W2_ROW0:_W2_ROW0 + LANES, :]          # (128, 128)
    w3 = p_ref[_W3_ROW0:_W3_ROW0 + LANES, :]          # (128, 128)

    # Layer 1: (TB,4)@(4,128) on the MXU; zero-padded lanes stay exactly 0
    # through the bias add and ReLU.
    h1 = jnp.maximum(jnp.dot(x, w1, preferred_element_type=jnp.float32) + b1, 0.0)
    # Layers 2 & 3: lane-padded 128x128 MXU matmuls with f32 accumulation.
    h2 = jnp.maximum(jnp.dot(h1, w2, preferred_element_type=jnp.float32) + b2, 0.0)
    out = jnp.dot(h2, w3, preferred_element_type=jnp.float32) + b3   # (TB, 128)

    # Only the first OUT_F lanes are valid; output array is (B, OUT_F) so the
    # HBM writeback is ~8 B/row instead of 512 B/row.
    o_ref[...] = out[:, :OUT_F].astype(o_ref.dtype)


def pack_params(params):
    """One-time packing of PyTorch-convention params (weights (out,in), biases (out,))
    into a single lane/sublane-padded f32 slab. Do this at parameter-creation time."""
    assert params["w1"].shape == (HID, IN_F)
    assert params["w2"].shape == (HID, HID)
    assert params["w3"].shape == (OUT_F, HID)
    slab = jnp.zeros((_SLAB_ROWS, LANES), jnp.float32)
    slab = slab.at[_W1_ROW0:_W1_ROW0 + IN_F, :HID].set(params["w1"].astype(jnp.float32).T)
    slab = slab.at[_B1_ROW, :HID].set(params["b1"].astype(jnp.float32))
    slab = slab.at[_B2_ROW, :HID].set(params["b2"].astype(jnp.float32))
    slab = slab.at[_B3_ROW, :OUT_F].set(params["b3"].astype(jnp.float32))
    slab = slab.at[_W2_ROW0:_W2_ROW0 + HID, :HID].set(params["w2"].astype(jnp.float32).T)
    slab = slab.at[_W3_ROW0:_W3_ROW0 + HID, :OUT_F].set(params["w3"].astype(jnp.float32).T)
    return slab


def qnetwork_forward(x, packed_params, *, block_b=4096):
    """x: (B, 4). packed_params: output of pack_params(). Returns (B, 2) f32."""
    B = x.shape[0]
    x = x.astype(jnp.float32)

    # Even-split the batch into tiles (multiple of 8 rows, <= block_b) so the
    # final block is never nearly empty, and use >= 2 grid steps once there is
    # enough work so v7x's two TensorCores both get a share of the parallel axis.
    n_tiles = max(pl.cdiv(B, block_b), 2) if B >= 16 else 1
    tb = min(block_b, max(8, _round_up(pl.cdiv(B, n_tiles), 8)))
    grid = (pl.cdiv(B, tb),)

    cost = pl.CostEstimate(
        flops=2 * B * (IN_F * HID + HID * HID + HID * OUT_F),
        transcendentals=0,
        bytes_accessed=B * (IN_F + OUT_F) * 4 + _SLAB_ROWS * LANES * 4,
    )

    return pl.pallas_call(
        _qnet_kernel,
        out_shape=jax.ShapeDtypeStruct((B, OUT_F), jnp.float32),
        grid_spec=pltpu.PrefetchScalarGridSpec(
            num_scalar_prefetch=0,
            grid=grid,
            in_specs=[
                pl.BlockSpec((tb, IN_F), lambda i: (i, 0)),           # activations stream
                pl.BlockSpec((_SLAB_ROWS, LANES), lambda i: (0, 0)),  # weights resident
            ],
            out_specs=pl.BlockSpec((tb, OUT_F), lambda i: (i, 0)),    # narrow output
        ),
        compiler_params=pltpu.CompilerParams(
            dimension_semantics=("parallel",),
            vmem_limit_bytes=32 * 1024 * 1024,   # safe on v5e/v6e/v7x; covers tb=4096
        ),
        cost_estimate=cost,
    )(x, packed_params)


def init_params(key):
    """Deterministic synthetic params matching nn.Linear(4,25), (25,25), (25,2)."""
    ks = jax.random.split(key, 6)

    def linear_init(kw, kb, fan_in, fan_out):
        bound = 1.0 / jnp.sqrt(fan_in)
        w = jax.random.uniform(kw, (fan_out, fan_in), jnp.float32, -bound, bound)
        b = jax.random.uniform(kb, (fan_out,), jnp.float32, -bound, bound)
        return w, b

    w1, b1 = linear_init(ks[0], ks[1], 4, 25)
    w2, b2 = linear_init(ks[2], ks[3], 25, 25)
    w3, b3 = linear_init(ks[4], ks[5], 25, 2)
    return {"w1": w1, "b1": b1, "w2": w2, "b2": b2, "w3": w3, "b3": b3}


def qnetwork_ref(x, params):
    """Pure-JAX reference for correctness check."""
    h1 = jnp.maximum(x @ params["w1"].T + params["b1"], 0.0)
    h2 = jnp.maximum(h1 @ params["w2"].T + params["b2"], 0.0)
    return h2 @ params["w3"].T + params["b3"]


if __name__ == "__main__":
    key = jax.random.PRNGKey(0)
    k_params, k_x1, k_x2 = jax.random.split(key, 3)
    params = init_params(k_params)
    packed = pack_params(params)            # one-time packing, outside the call path

    fwd = jax.jit(functools.partial(qnetwork_forward, block_b=4096))

    # Small batch (typical single-step inference).
    B = 8
    x = jax.random.normal(k_x1, (B, IN_F), jnp.float32)
    out = jax.block_until_ready(fwd(x, packed))
    ref = qnetwork_ref(x, params)
    assert out.shape == (B, OUT_F), out.shape
    assert jnp.allclose(out, ref, atol=1e-4, rtol=1e-4), "mismatch vs reference (B=8)"

    # Non-multiple-of-tile batch to exercise the ragged final block (replay-buffer style).
    B2 = 50
    x2 = jax.random.normal(k_x2, (B2, IN_F), jnp.float32)
    out2 = jax.block_until_ready(fwd(x2, packed))
    ref2 = qnetwork_ref(x2, params)
    assert out2.shape == (B2, OUT_F), out2.shape
    assert jnp.allclose(out2, ref2, atol=1e-4, rtol=1e-4), "mismatch vs reference (B=50)"

    print("KERNEL_OK")
</pallas_src>

<mosaic_0001>
module attributes {stable_mosaic.version = 11 : i64} {
  func.func @_qnet_kernel(%arg0: i32, %arg1: memref<8x4xf32, #tpu.memory_space<vmem>>, %arg2: memref<264x128xf32, #tpu.memory_space<vmem>>, %arg3: memref<8x2xf32, #tpu.memory_space<vmem>>) attributes {dimension_semantics = [#tpu.dimension_semantics<parallel>], iteration_bounds = array<i64: 1>, scalar_prefetch = 0 : i64, scratch_operands = 0 : i64, tpu.core_type = #tpu.core_type<tc>, window_params = [{transform_indices = @transform_0, window_bounds = array<i64: 8, 4>}, {pipeline_mode = #tpu.pipeline_mode<synchronous>, transform_indices = @transform_1, window_bounds = array<i64: 264, 128>}, {transform_indices = @transform_2, window_bounds = array<i64: 8, 2>}]} {
    %c0 = arith.constant 0 : index
    %c0_0 = arith.constant 0 : index
    %0 = vector.load %arg1[%c0, %c0_0] : memref<8x4xf32, #tpu.memory_space<vmem>>, vector<8x4xf32>
    %c0_1 = arith.constant 0 : index
    %c0_2 = arith.constant 0 : index
    %1 = vector.load %arg2[%c0_1, %c0_2] : memref<264x128xf32, #tpu.memory_space<vmem>>, vector<4x128xf32>
    %c4 = arith.constant 4 : index
    %c0_3 = arith.constant 0 : index
    %2 = vector.load %arg2[%c4, %c0_3] : memref<264x128xf32, #tpu.memory_space<vmem>>, vector<1x128xf32>
    %c5 = arith.constant 5 : index
    %c0_4 = arith.constant 0 : index
    %3 = vector.load %arg2[%c5, %c0_4] : memref<264x128xf32, #tpu.memory_space<vmem>>, vector<1x128xf32>
    %c6 = arith.constant 6 : index
    %c0_5 = arith.constant 0 : index
    %4 = vector.load %arg2[%c6, %c0_5] : memref<264x128xf32, #tpu.memory_space<vmem>>, vector<1x128xf32>
    %c8 = arith.constant 8 : index
    %c0_6 = arith.constant 0 : index
    %5 = vector.load %arg2[%c8, %c0_6] : memref<264x128xf32, #tpu.memory_space<vmem>>, vector<128x128xf32>
    %c136 = arith.constant 136 : index
    %c0_7 = arith.constant 0 : index
    %6 = vector.load %arg2[%c136, %c0_7] : memref<264x128xf32, #tpu.memory_space<vmem>>, vector<128x128xf32>
    %cst = arith.constant dense<0.000000e+00> : vector<8x128xf32>
    %7 = tpu.matmul %0, %1, %cst {dimension_numbers = #tpu.dot_dimension_numbers<[1], [0], [0], [1], [0, 0, 1, 1], [], []>} : vector<8x4xf32>, vector<4x128xf32>, vector<8x128xf32> -> vector<8x128xf32>
    %8 = vector.broadcast %2 : vector<1x128xf32> to vector<8x128xf32>
    %9 = arith.addf %7, %8 : vector<8x128xf32>
    %cst_8 = arith.constant 0.000000e+00 : f32
    %10 = vector.broadcast %cst_8 : f32 to vector<8x128xf32>
    %11 = arith.maximumf %9, %10 : vector<8x128xf32>
    %cst_9 = arith.constant dense<0.000000e+00> : vector<8x128xf32>
    %12 = tpu.matmul %11, %5, %cst_9 {dimension_numbers = #tpu.dot_dimension_numbers<[1], [0], [0], [1], [0, 0, 1, 1], [], []>} : vector<8x128xf32>, vector<128x128xf32>, vector<8x128xf32> -> vector<8x128xf32>
    %13 = vector.broadcast %3 : vector<1x128xf32> to vector<8x128xf32>
    %14 = arith.addf %12, %13 : vector<8x128xf32>
    %cst_10 = arith.constant 0.000000e+00 : f32
    %15 = vector.broadcast %cst_10 : f32 to vector<8x128xf32>
    %16 = arith.maximumf %14, %15 : vector<8x128xf32>
    %cst_11 = arith.constant dense<0.000000e+00> : vector<8x128xf32>
    %17 = tpu.matmul %16, %6, %cst_11 {dimension_numbers = #tpu.dot_dimension_numbers<[1], [0], [0], [1], [0, 0, 1, 1], [], []>} : vector<8x128xf32>, vector<128x128xf32>, vector<8x128xf32> -> vector<8x128xf32>
    %18 = vector.broadcast %4 : vector<1x128xf32> to vector<8x128xf32>
    %19 = arith.addf %17, %18 : vector<8x128xf32>
    %20 = vector.extract_strided_slice %19 {offsets = [0, 0], sizes = [8, 2], strides = [1, 1]} : vector<8x128xf32> to vector<8x2xf32>
    %c0_12 = arith.constant 0 : index
    %c0_13 = arith.constant 0 : index
    %21 = vector.load %arg3[%c0_12, %c0_13] : memref<8x2xf32, #tpu.memory_space<vmem>>, vector<8x2xf32>
    tpu.vector_store %arg3[%c0_12, %c0_13], %20 {strides = array<i32>} : memref<8x2xf32, #tpu.memory_space<vmem>>, vector<8x2xf32>,
    return
  }
  func.func @transform_0(%arg0: i32) -> (i32, i32) {
    %c0_i32 = arith.constant 0 : i32
    %c0_i32_0 = arith.constant 0 : i32
    return %arg0, %c0_i32 : i32, i32
  }
  func.func @transform_1(%arg0: i32) -> (i32, i32) {
    %c0_i32 = arith.constant 0 : i32
    %c0_i32_0 = arith.constant 0 : i32
    %c0_i32_1 = arith.constant 0 : i32
    return %c0_i32, %c0_i32_0 : i32, i32
  }
  func.func @transform_2(%arg0: i32) -> (i32, i32) {
    %c0_i32 = arith.constant 0 : i32
    %c0_i32_0 = arith.constant 0 : i32
    return %arg0, %c0_i32 : i32, i32
  }
}

</mosaic_0001>

<bundles_post_ra>
// kernel: qnetwork_forward.1
= control target key start
LH: loop header
LB: loop body
LE: loop exit
PB: predicated region body
PF: predicated region fallthrough
CT: control target
= control target key end

     0   :  { %7 = vsyncpa [#allocation3], 0  ;;  %s444_s9 = smov [#allocation2]   ;;  %s512_s0 = inlined_call_operand.vmem [shape: f32[8,4], index: 0, kind: input, shape index: {}]   ;;  %s513_s1 = inlined_call_operand.hbm [shape: f32[264,128], index: 1, kind: input, shape index: {}]   ;;  %s514_s2 = inlined_call_operand.vmem [shape: f32[8,2], index: 2, kind: output, shape index: {}]  }
   0x1   :  { %s15_s10 = sshll.u32 %s444_s9, 4  ;;  %s16_s10 = int_to_ptr.vmem [resolvable:$true] %s15_s10 }
   0x2   :  { %s430_s11 = scalar_lea.vmem %s16_s10, 4224  ;;  %p435_p1 = scmp.lt.s32.totalorder %s16_s10, %s16_s10 }
   0x3   :  { %p431_p0 = scmp.ne.s32.totalorder %s16_s10, %s430_s11  ;;  %p436_p2 = scmp.lt.s32.totalorder %s430_s11, %s430_s11 }
   0x5   :  { %p437_p3 = por %p436_p2, %p435_p1 }
   0x7   :  { %p438_p4 = pnand %p437_p3, %p431_p0 }
   0x9   :  { %441 = shalt.err (!%p438_p4)
}
   0xa   :  { %s445_s12 = smov 128   ;;  %s446_s13 = smov 8  }
   0xb   :  { %21 = dma.hbm_to_vmem [thread:$0]  %s513_s1, 4224, %s16_s10, [#allocation3], %s445_s12, %s445_s12, %s446_s13  }
   0xc   :  { %442 = dma.done.wait [#allocation3], 4224  }
   0xd   :  { %443 = vsyncadd [#allocation3], 4294963072  ;;  %v447_v0 = vmov 0.0   ;;  %vm448_vm0 = vmmov 0   ;;  %vm70_vm1 = vcmask 1043456   ;;  %vm66_vm2 = vcmask 31744  }
   0xe   :  { %342 = vmatprep.subr.mxu0 %v447_v0  ;;  %344 = vmatprep.mubr.msk.f32.mxu0 %vm448_vm0, %v447_v0  ;;  %v26_v1 = vld [vmem:[#allocation2] sm:$0xf]  ;;  %v44_v4 = vld [vmem:[#allocation2 + $0x78] sm:$0xff]  ;;  %v43_v5 = vld [vmem:[#allocation2 + $0x70] sm:$0xff]  ;;  %vm294_vm3 = vcmask 15360  }
   0xf   :  { %347 = vmatprep.subr.mxu1 %v447_v0  ;;  %379 = vmatprep.mubr.msk.f32.mxu1 %vm448_vm0, %v447_v0  ;;  %v25_v2 = vld [vmem:[%s512_s0] sm:$0xff]  ;;  %v42_v6 = vld [vmem:[#allocation2 + $0x68] sm:$0xff]  ;;  %v40_v8 = vld [vmem:[#allocation2 + $0x58] sm:$0xff] }
  0x10   :  { %v45_v3 = vld [vmem:[#allocation2 + $0x80] sm:$0xff]  ;;  %343 = vmatpush3.msk.msra.mxu0 %vm70_vm1, %v26_v1  ;;  %v39_v9 = vld [vmem:[#allocation2 + $0x50] sm:$0xff]  ;;  %v38_v10 = vld [vmem:[#allocation2 + $0x48] sm:$0xff] }
  0x11   :  { %348 = vmatpush3.msra.mxu1 %v45_v3  ;;  %345 = vmatmul.mubr.msk.f32.vlgmr.msra.gmra.mxu0 %vm66_vm2, %v25_v2  ;;  %v41_v7 = vld [vmem:[#allocation2 + $0x60] sm:$0xff]  ;;  %v36_v12 = vld [vmem:[#allocation2 + $0x38] sm:$0xff]  ;;  %v35_v13 = vld [vmem:[#allocation2 + $0x30] sm:$0xff] }
  0x12   :  { %349 = vmatprep.subr.mxu1 %v447_v0  ;;  %382 = vmatprep.subr.mxu0 %v447_v0  ;;  %v37_v11 = vld [vmem:[#allocation2 + $0x40] sm:$0xff]  ;;  %v34_v14 = vld [vmem:[#allocation2 + $0x28] sm:$0xff]  ;;  %v32_v16 = vld [vmem:[#allocation2 + $0x18] sm:$0xff] }
  0x13   :  { %350 = vmatpush3.msra.mxu1 %v44_v4  ;;  %414 = vmatprep.mubr.msk.f32.mxu0 %vm448_vm0, %v447_v0  ;;  %v33_v15 = vld [vmem:[#allocation2 + $0x20] sm:$0xff]  ;;  %v31_v17 = vld [vmem:[#allocation2 + $0x10] sm:$0xff]  ;;  %v30_v18 = vld [vmem:[#allocation2 + $0x8] sm:$0xff] }
  0x14   :  { %351 = vmatprep.subr.mxu1 %v447_v0  ;;  %v61_v19 = vld [vmem:[#allocation2 + $0x100] sm:$0xff]  ;;  %v60_v20 = vld [vmem:[#allocation2 + $0xf8] sm:$0xff]  ;;  %v59_v21 = vld [vmem:[#allocation2 + $0xf0] sm:$0xff] }
  0x15   :  { %352 = vmatpush3.msra.mxu1 %v43_v5  ;;  %383 = vmatpush3.msra.mxu0 %v61_v19  ;;  %v58_v22 = vld [vmem:[#allocation2 + $0xe8] sm:$0xff]  ;;  %v57_v23 = vld [vmem:[#allocation2 + $0xe0] sm:$0xff]  ;;  %v56_v24 = vld [vmem:[#allocation2 + $0xd8] sm:$0xff] }
  0x16   :  { %353 = vmatprep.subr.mxu1 %v447_v0  ;;  %384 = vmatprep.subr.mxu0 %v447_v0  ;;  %v55_v25 = vld [vmem:[#allocation2 + $0xd0] sm:$0xff]  ;;  %v54_v26 = vld [vmem:[#allocation2 + $0xc8] sm:$0xff]  ;;  %v53_v27 = vld [vmem:[#allocation2 + $0xc0] sm:$0xff] }
  0x17   :  { %354 = vmatpush3.msra.mxu1 %v42_v6  ;;  %385 = vmatpush3.msra.mxu0 %v60_v20  ;;  %v52_v28 = vld [vmem:[#allocation2 + $0xb8] sm:$0xff]  ;;  %v51_v29 = vld [vmem:[#allocation2 + $0xb0] sm:$0xff]  ;;  %v50_v30 = vld [vmem:[#allocation2 + $0xa8] sm:$0xff] }
  0x18   :  { %355 = vmatprep.subr.mxu1 %v447_v0  ;;  %386 = vmatprep.subr.mxu0 %v447_v0  ;;  %v49_v31 = vld [vmem:[#allocation2 + $0xa0] sm:$0xff]  ;;  %v48_v37 = vld [vmem:[#allocation2 + $0x98] sm:$0xff]  ;;  %v47_v38 = vld [vmem:[#allocation2 + $0x90] sm:$0xff] }
  0x19   :  { %356 = vmatpush3.msra.mxu1 %v41_v7  ;;  %387 = vmatpush3.msra.mxu0 %v59_v21  ;;  %v301_v32 = vld [vmem:[#allocation2 + $0x4] ss:$0 sm:$0xff]  ;;  %v46_v39 = vld [vmem:[#allocation2 + $0x88] sm:$0xff]  ;;  %v304_v40 = vld [vmem:[#allocation2 + $0x5] ss:$0 sm:$0xff] }
  0x1a   :  { %357 = vmatprep.subr.mxu1 %v447_v0  ;;  %388 = vmatprep.subr.mxu0 %v447_v0  ;;  %v305_v45 = vld [vmem:[#allocation2 + $0x6] ss:$0 sm:$0xff] }
  0x1b   :  { %358 = vmatpush3.msra.mxu1 %v40_v8  ;;  %389 = vmatpush3.msra.mxu0 %v58_v22 }
  0x1c   :  { %359 = vmatprep.subr.mxu1 %v447_v0  ;;  %390 = vmatprep.subr.mxu0 %v447_v0 }
  0x1d   :  { %360 = vmatpush3.msra.mxu1 %v39_v9  ;;  %391 = vmatpush3.msra.mxu0 %v57_v23 }
  0x1e   :  { %361 = vmatprep.subr.mxu1 %v447_v0  ;;  %392 = vmatprep.subr.mxu0 %v447_v0 }
  0x1f   :  { %362 = vmatpush3.msra.mxu1 %v38_v10  ;;  %393 = vmatpush3.msra.mxu0 %v56_v24 }
  0x20   :  { %363 = vmatprep.subr.mxu1 %v447_v0  ;;  %394 = vmatprep.subr.mxu0 %v447_v0 }
  0x21   :  { %364 = vmatpush3.msra.mxu1 %v37_v11  ;;  %395 = vmatpush3.msra.mxu0 %v55_v25 }
  0x22   :  { %365 = vmatprep.subr.mxu1 %v447_v0  ;;  %396 = vmatprep.subr.mxu0 %v447_v0 }
  0x23   :  { %366 = vmatpush3.msra.mxu1 %v36_v12  ;;  %397 = vmatpush3.msra.mxu0 %v54_v26 }
  0x24   :  { %367 = vmatprep.subr.mxu1 %v447_v0  ;;  %398 = vmatprep.subr.mxu0 %v447_v0 }
  0x25   :  { %368 = vmatpush3.msra.mxu1 %v35_v13  ;;  %399 = vmatpush3.msra.mxu0 %v53_v27 }
  0x26   :  { %369 = vmatprep.subr.mxu1 %v447_v0  ;;  %400 = vmatprep.subr.mxu0 %v447_v0 }
  0x27   :  { %370 = vmatpush3.msra.mxu1 %v34_v14  ;;  %401 = vmatpush3.msra.mxu0 %v52_v28 }
  0x28   :  { %371 = vmatprep.subr.mxu1 %v447_v0  ;;  %402 = vmatprep.subr.mxu0 %v447_v0 }
  0x29   :  { %372 = vmatpush3.msra.mxu1 %v33_v15  ;;  %403 = vmatpush3.msra.mxu0 %v51_v29 }
  0x2a   :  { %373 = vmatprep.subr.mxu1 %v447_v0  ;;  %404 = vmatprep.subr.mxu0 %v447_v0 }
  0x2b   :  { %374 = vmatpush3.msra.mxu1 %v32_v16  ;;  %405 = vmatpush3.msra.mxu0 %v50_v30 }
  0x2c   :  { %375 = vmatprep.subr.mxu1 %v447_v0  ;;  %406 = vmatprep.subr.mxu0 %v447_v0 }
  0x2d   :  { %376 = vmatpush3.msra.mxu1 %v31_v17  ;;  %407 = vmatpush3.msra.mxu0 %v49_v31 }
  0x2e   :  { %377 = vmatprep.subr.mxu1 %v447_v0  ;;  %408 = vmatprep.subr.mxu0 %v447_v0 }
  0x2f   :  { %378 = vmatpush3.msra.mxu1 %v30_v18  ;;  %409 = vmatpush3.msra.mxu0 %v48_v37 }
  0x30   :  { %410 = vmatprep.subr.mxu0 %v447_v0 }
  0x31   :  { %411 = vmatpush3.msra.mxu0 %v47_v38 }
  0x32   :  { %412 = vmatprep.subr.mxu0 %v447_v0 }
  0x33   :  { %413 = vmatpush3.msra.mxu0 %v46_v39 }
  0xd1   :  { %v140_v33 = vpop.f32.mrf.mxu0 }
  0xd2   :  { %v141_v34 = vadd.f32 %v301_v32, %v140_v33 }
  0xd3   :  { %v346_v35 = vpop.f32.mrf.mxu0 }
  0xd4   :  { %v144_v36 = vmax.f32 %v141_v34, 0.0 }
  0xd6   :  { %380 = vmatmul.mubr.f32.vlgmr.msra.gmra.mxu1 %v144_v36 }
 0x196   :  { %v215_v41 = vpop.f32.mrf.mxu1 }
 0x197   :  { %v216_v42 = vadd.f32 %v304_v40, %v215_v41 }
 0x198   :  { %v381_v43 = vpop.f32.mrf.mxu1 }
 0x199   :  { %v219_v44 = vmax.f32 %v216_v42, 0.0 }
 0x19b   :  { %415 = vmatmul.mubr.f32.vlgmr.msra.gmra.mxu0 %v219_v44 }
 0x25b   :  { %v290_v46 = vpop.f32.mrf.mxu0 }
 0x25c   :  { %v291_v47 = vadd.f32 %v305_v45, %v290_v46 }
 0x25d   :  { %v416_v48 = vpop.f32.mrf.mxu0 }
 0x25e   :  { %295 = vst.msk [vmem:[%s514_s2] sm:$0xff] %vm294_vm3, %v291_v47 }
 0x25f   :  { %300 = vsyncpa [#allocation3], 1 }

</bundles_post_ra>
